<compile_context>
chip_gen: v5e
topology: v5e:2x2
jax: 0.10.0
libtpu: 0.0.40
codegen_flags: <defaults>
</compile_context>

<pallas_src>
import functools

import numpy as np
import jax
import jax.numpy as jnp
from jax.experimental import pallas as pl
from jax.experimental.pallas import tpu as pltpu

_TAIL = 128  # halo chunks (lanes) fetched past each frame tile; must cover nfft//hop - 1


def _round_up(x, m):
    return (x + m - 1) // m * m


def _dft_weights(nfft, n_freq, f_pad):
    """Periodic-Hann-windowed DFT matrix, cos rows stacked over sin rows, (2*f_pad, nfft)."""
    n = np.arange(nfft, dtype=np.float64)
    win = 0.5 * (1.0 - np.cos(2.0 * np.pi * n / nfft))      # == torch.hann_window(nfft)
    k = np.arange(n_freq, dtype=np.float64)
    ang = 2.0 * np.pi * np.outer(k, n) / nfft               # (n_freq, nfft)
    wt = np.zeros((2 * f_pad, nfft), dtype=np.float32)
    wt[:n_freq] = (np.cos(ang) * win[None, :]).astype(np.float32)
    wt[f_pad:f_pad + n_freq] = (np.sin(ang) * win[None, :]).astype(np.float32)
    return jnp.asarray(wt, dtype=jnp.bfloat16)


def _make_stft_kernel(r, f_pad, n_freq, tf):
    def kernel(sig_ref, halo_ref, w_ref, out_ref):
        # sig_ref : (hop, tf)          bf16  chunk-transposed signal, chunks [t0, t0+tf)
        # halo_ref: (hop, _TAIL)       bf16  chunks [t0+tf, t0+tf+_TAIL)
        # w_ref   : (2*f_pad, nfft)    bf16  windowed DFT (cos rows, sin rows at f_pad)
        # out_ref : (n_freq, tf)       f32   magnitude tile (freq x frames)
        main = sig_ref[...]
        if r > 1:
            ext = jnp.concatenate([main, halo_ref[...]], axis=-1)   # (hop, tf + _TAIL)
            # Frame tile: frame[s*hop + j, u] = x[(t0+u+s)*hop + j].  Assembled once so
            # the r-1 lane shifts stay out of the accumulation chain.
            frame = jnp.concatenate([ext[:, s:s + tf] for s in range(r)], axis=0)
        else:
            frame = main                                            # (nfft, tf)
        # One K=nfft matmul; f32 accumulation stays inside the MXU result path.
        acc = jnp.dot(w_ref[...], frame, preferred_element_type=jnp.float32)
        re = acc[:n_freq]
        im = acc[f_pad:f_pad + n_freq]
        out_ref[...] = jnp.sqrt(re * re + im * im)

    return kernel


@functools.partial(jax.jit, static_argnames=("nfft", "hop", "tf_max"))
def stft_mag(x, nfft=1024, hop=256, tf_max=512):
    """x: (B, T) or (T,) float -> |STFT| of shape (B, nfft//2 + 1, 1 + T//hop), float32."""
    squeeze = (x.ndim == 1)
    if squeeze:
        x = x[None, :]
    x = x.astype(jnp.float32)
    B, T = x.shape

    # TODO(synk): support hop values that do not divide nfft (not needed for the
    # module defaults nfft=1024, hop=256).
    assert nfft % hop == 0, "in-kernel framing assumes hop | nfft"
    assert T > nfft // 2, "reflect padding (torch center=True) requires T > nfft//2"
    r = nfft // hop
    assert r <= _TAIL, "halo of _TAIL chunks must cover nfft//hop - 1 frame overlap"
    assert tf_max % _TAIL == 0, "tf_max must be a multiple of 128 (lane tiling)"

    n_freq = nfft // 2 + 1
    n_frames = 1 + T // hop
    f_pad = _round_up(n_freq, 128)                 # weight/acc row padding (MXU tiling)

    # Frames per tile (output lane dim).  Shrink for short clips so 2-TC chips (v7x)
    # still see a handful of parallel grid steps.
    tf = min(tf_max, _round_up(n_frames, _TAIL))
    while tf > _TAIL and (tf // 2) % _TAIL == 0 and B * (-(-n_frames // tf)) < 4:
        tf //= 2
    n_tiles = -(-n_frames // tf)
    c_pad = n_tiles * tf + _TAIL                   # chunks incl. slack for halo blocks

    # ---- glue (~1x signal traffic): reflect pad, cast to bf16, chunk, transpose ----
    pad = nfft // 2
    xp = jnp.pad(x, ((0, 0), (pad, pad)), mode="reflect")            # (B, T + nfft) f32
    xp = xp.astype(jnp.bfloat16)                                     # cast BEFORE transpose
    xp = jnp.pad(xp, ((0, 0), (0, c_pad * hop - (T + nfft))))        # zero tail
    xct = xp.reshape(B, c_pad, hop).transpose(0, 2, 1)               # (B, hop, c_pad) bf16

    w = _dft_weights(nfft, n_freq, f_pad)                            # (2*f_pad, nfft) bf16

    halo_stride = tf // _TAIL
    out = pl.pallas_call(
        _make_stft_kernel(r, f_pad, n_freq, tf),
        out_shape=jax.ShapeDtypeStruct((B, n_freq, n_frames), jnp.float32),
        grid_spec=pltpu.PrefetchScalarGridSpec(
            num_scalar_prefetch=0,
            grid=(B, n_tiles),
            in_specs=[
                # main chunk range [t*tf, (t+1)*tf)
                pl.BlockSpec((pl.Squeezed(), hop, tf), lambda b, t: (b, 0, t)),
                # halo: next _TAIL chunks (covers the r-1 overlap of the last frames)
                pl.BlockSpec((pl.Squeezed(), hop, _TAIL),
                             lambda b, t: (b, 0, (t + 1) * halo_stride)),
                # grid-invariant weights (constant index map -> fetched once)
                pl.BlockSpec((2 * f_pad, nfft), lambda b, t: (0, 0)),
            ],
            # Freq block == full dim (513 rows legal); frame dim uses partial edge
            # blocks (OOB columns dropped by the DMA) -> no post-kernel slice/copy.
            out_specs=pl.BlockSpec((pl.Squeezed(), n_freq, tf), lambda b, t: (b, 0, t)),
        ),
        compiler_params=pltpu.CompilerParams(
            dimension_semantics=("parallel", "parallel"),
            vmem_limit_bytes=32 * 1024 * 1024),
        cost_estimate=pl.CostEstimate(
            flops=int(2 * B * n_tiles * tf * (2 * f_pad) * nfft),
            transcendentals=int(B * n_freq * n_frames),
            bytes_accessed=int(B * hop * c_pad * 2 + w.size * 2
                               + B * n_freq * n_frames * 4)),
    )(xct, xct, w)

    return out[0] if squeeze else out


def _reference_stft_mag(x, nfft, hop):
    """Pure-JAX f32 reference (same torch.stft semantics), for the self-check."""
    x = jnp.asarray(x, jnp.float32)
    if x.ndim == 1:
        x = x[None]
    T = x.shape[-1]
    n_freq = nfft // 2 + 1
    n_frames = 1 + T // hop
    pad = nfft // 2
    xp = jnp.pad(x, ((0, 0), (pad, pad)), mode="reflect")
    idx = jnp.arange(n_frames)[:, None] * hop + jnp.arange(nfft)[None, :]
    frames = xp[:, idx]                                              # (B, n_frames, nfft)
    n = jnp.arange(nfft, dtype=jnp.float32)
    win = 0.5 * (1.0 - jnp.cos(2.0 * jnp.pi * n / nfft))
    k = jnp.arange(n_freq, dtype=jnp.float32)
    ang = 2.0 * jnp.pi * k[:, None] * n[None, :] / nfft
    fw = frames * win
    hi = jax.lax.Precision.HIGHEST
    re = jnp.einsum("btn,fn->bft", fw, jnp.cos(ang), precision=hi)
    im = jnp.einsum("btn,fn->bft", fw, jnp.sin(ang), precision=hi)
    return jnp.sqrt(re * re + im * im)


if __name__ == "__main__":
    key = jax.random.PRNGKey(0)
    B, T = 2, 1024
    nfft, hop = 256, 64          # small-shape stand-ins for the (1024, 256) defaults
    x = jax.random.normal(key, (B, T), dtype=jnp.float32)

    mag = stft_mag(x, nfft=nfft, hop=hop)
    mag = jax.block_until_ready(mag)

    expected_shape = (B, nfft // 2 + 1, 1 + T // hop)
    assert mag.shape == expected_shape, (mag.shape, expected_shape)
    assert bool(jnp.all(jnp.isfinite(mag)))

    ref = _reference_stft_mag(x, nfft, hop)
    err = float(jnp.max(jnp.abs(mag - ref)))
    scale = float(jnp.max(ref))
    assert err <= 0.03 * scale + 1e-3, ("bf16 STFT magnitude mismatch", err, scale)

    print("KERNEL_OK")
</pallas_src>

<mosaic_0001>
module attributes {stable_mosaic.version = 11 : i64} {
  func.func @kernel(%arg0: i32, %arg1: i32, %arg2: memref<1x64x128xbf16, #tpu.memory_space<vmem>>, %arg3: memref<1x64x128xbf16, #tpu.memory_space<vmem>>, %arg4: memref<512x256xbf16, #tpu.memory_space<vmem>>, %arg5: memref<1x129x128xf32, #tpu.memory_space<vmem>>) attributes {dimension_semantics = [#tpu.dimension_semantics<parallel>, #tpu.dimension_semantics<parallel>], iteration_bounds = array<i64: 2, 1>, scalar_prefetch = 0 : i64, scratch_operands = 0 : i64, tpu.core_type = #tpu.core_type<tc>, window_params = [{transform_indices = @transform_0, window_bounds = array<i64: 1, 64, 128>}, {transform_indices = @transform_1, window_bounds = array<i64: 1, 64, 128>}, {pipeline_mode = #tpu.pipeline_mode<synchronous>, transform_indices = @transform_2, window_bounds = array<i64: 512, 256>}, {transform_indices = @transform_3, window_bounds = array<i64: 1, 129, 128>}]} {
    %c0 = arith.constant 0 : index
    %c0_0 = arith.constant 0 : index
    %c0_1 = arith.constant 0 : index
    %0 = vector.load %arg2[%c0, %c0_0, %c0_1] : memref<1x64x128xbf16, #tpu.memory_space<vmem>>, vector<1x64x128xbf16>
    %1 = vector.shape_cast %0 : vector<1x64x128xbf16> to vector<64x128xbf16>
    %c0_2 = arith.constant 0 : index
    %c0_3 = arith.constant 0 : index
    %c0_4 = arith.constant 0 : index
    %2 = vector.load %arg3[%c0_2, %c0_3, %c0_4] : memref<1x64x128xbf16, #tpu.memory_space<vmem>>, vector<1x64x128xbf16>
    %3 = vector.shape_cast %2 : vector<1x64x128xbf16> to vector<64x128xbf16>
    %4 = tpu.concatenate %1, %3 in 1 : vector<64x128xbf16>, vector<64x128xbf16> -> vector<64x256xbf16>
    %5 = vector.extract_strided_slice %4 {offsets = [0, 0], sizes = [64, 128], strides = [1, 1]} : vector<64x256xbf16> to vector<64x128xbf16>
    %6 = vector.extract_strided_slice %4 {offsets = [0, 1], sizes = [64, 128], strides = [1, 1]} : vector<64x256xbf16> to vector<64x128xbf16>
    %7 = vector.extract_strided_slice %4 {offsets = [0, 2], sizes = [64, 128], strides = [1, 1]} : vector<64x256xbf16> to vector<64x128xbf16>
    %8 = vector.extract_strided_slice %4 {offsets = [0, 3], sizes = [64, 128], strides = [1, 1]} : vector<64x256xbf16> to vector<64x128xbf16>
    %9 = tpu.concatenate %5, %6, %7, %8 in 0 : vector<64x128xbf16>, vector<64x128xbf16>, vector<64x128xbf16>, vector<64x128xbf16> -> vector<256x128xbf16>
    %c0_5 = arith.constant 0 : index
    %c0_6 = arith.constant 0 : index
    %10 = vector.load %arg4[%c0_5, %c0_6] : memref<512x256xbf16, #tpu.memory_space<vmem>>, vector<512x256xbf16>
    %cst = arith.constant dense<0.000000e+00> : vector<512x128xf32>
    %11 = tpu.matmul %10, %9, %cst {dimension_numbers = #tpu.dot_dimension_numbers<[1], [0], [0], [1], [0, 0, 1, 1], [], []>} : vector<512x256xbf16>, vector<256x128xbf16>, vector<512x128xf32> -> vector<512x128xf32>
    %12 = vector.extract_strided_slice %11 {offsets = [0, 0], sizes = [129, 128], strides = [1, 1]} : vector<512x128xf32> to vector<129x128xf32>
    %13 = vector.extract_strided_slice %11 {offsets = [256, 0], sizes = [129, 128], strides = [1, 1]} : vector<512x128xf32> to vector<129x128xf32>
    %14 = arith.mulf %12, %12 : vector<129x128xf32>
    %15 = arith.mulf %13, %13 : vector<129x128xf32>
    %16 = arith.addf %14, %15 : vector<129x128xf32>
    %17 = math.sqrt %16 : vector<129x128xf32>
    %c0_7 = arith.constant 0 : index
    %c0_8 = arith.constant 0 : index
    %c0_9 = arith.constant 0 : index
    %18 = vector.load %arg5[%c0_7, %c0_8, %c0_9] : memref<1x129x128xf32, #tpu.memory_space<vmem>>, vector<1x129x128xf32>
    %19 = vector.shape_cast %18 : vector<1x129x128xf32> to vector<129x128xf32>
    %20 = vector.shape_cast %17 : vector<129x128xf32> to vector<1x129x128xf32>
    tpu.vector_store %arg5[%c0_7, %c0_8, %c0_9], %20 {strides = array<i32>} : memref<1x129x128xf32, #tpu.memory_space<vmem>>, vector<1x129x128xf32>,
    return
  }
  func.func @transform_0(%arg0: i32, %arg1: i32) -> (i32, i32, i32) {
    %c0_i32 = arith.constant 0 : i32
    %c0_i32_0 = arith.constant 0 : i32
    return %arg0, %c0_i32, %arg1 : i32, i32, i32
  }
  func.func @transform_1(%arg0: i32, %arg1: i32) -> (i32, i32, i32) {
    %c1_i32 = arith.constant 1 : i32
    %0 = arith.addi %arg1, %c1_i32 : i32
    %c1_i32_0 = arith.constant 1 : i32
    %1 = arith.muli %0, %c1_i32_0 : i32
    %c0_i32 = arith.constant 0 : i32
    %c0_i32_1 = arith.constant 0 : i32
    return %arg0, %c0_i32, %1 : i32, i32, i32
  }
  func.func @transform_2(%arg0: i32, %arg1: i32) -> (i32, i32) {
    %c0_i32 = arith.constant 0 : i32
    %c0_i32_0 = arith.constant 0 : i32
    %c0_i32_1 = arith.constant 0 : i32
    return %c0_i32, %c0_i32_0 : i32, i32
  }
  func.func @transform_3(%arg0: i32, %arg1: i32) -> (i32, i32, i32) {
    %c0_i32 = arith.constant 0 : i32
    %c0_i32_0 = arith.constant 0 : i32
    return %arg0, %c0_i32, %arg1 : i32, i32, i32
  }
}

</mosaic_0001>

<bundles_post_ra>
// kernel: stft_mag.1
= control target key start
LH: loop header
LB: loop body
LE: loop exit
PB: predicated region body
PF: predicated region fallthrough
CT: control target
= control target key end

     0   :  { %s2083_s12 = smov 0   ;;  %s2085_s13 = smov 0   ;;  %s2740_s0 = inlined_call_operand.vmem [shape: bf16[2,64,256], index: 0, kind: input, shape index: {}, may-alias: {0,1}]   ;;  %s2741_s1 = inlined_call_operand.vmem [shape: bf16[2,64,256], index: 1, kind: input, shape index: {}, may-alias: {0,1}]   ;;  %s2742_s2 = inlined_call_operand.vmem [shape: bf16[512,256], index: 2, kind: input, shape index: {}]   ;;  %s2743_s3 = inlined_call_operand.vmem [shape: f32[2,129,17], index: 3, kind: output, shape index: {}]  }
   0x1   :  { %s2087_s14 = smov 0   ;;  %s2089_s15 = smov 0  }
   0x2   :  { %s2091_s16 = smov 0  }
   0x3 LB: > { %s25_s17 = sadd.s32 1, %s2054_s15  ;;  %p41_p1 = scmp.ne.s32.totalorder %s2046_s13, %s2042_s12  ;;  %s2058_s16 = sphi %s2091_s16, %s13_s16   ;;  %s2054_s15 = sphi %s2089_s15, %s2748_s15   ;;  %s2050_s14 = sphi %s2087_s14, %s2747_s14   ;;  %s2046_s13 = sphi %s2085_s13, %s2746_s13   ;;  %s2042_s12 = sphi %s2083_s12, %s2745_s12  }
   0x4   : > { %p27_p0 = scmp.ge.s32.totalorder %s25_s17, 2  ;;  %p42_p2 = scmp.eq.s32.totalorder %s2058_s16, 0 }
   0x5   : > { %s34_s20 = sadd.s32 1, %s2046_s13  ;;  %p1543_p5 = scmp.ge.s32.totalorder %s2058_s16, 2 }
   0x6   : > { %s2750_s17 = smov (%p27_p0, %s25_s17), 0  ;;  %p2114_p3 = por %p42_p2, %p41_p1 }
   0x7   : > { %s29_s19 = ssub.s32 %s2054_s15, %s2750_s17  ;;  %149 = sbr.rel (%p1543_p5) target bundleno = 36 (0x24), region = 20 }
   0x8   : > { %p32_p4 = scmp.eq.s32.totalorder %s29_s19, 0 }
   0xa   : > { %s2122_s21 = scalar_select %p32_p4, %s2046_s13, %s34_s20  }
   0xc   : > { %152 = sbr.rel (!%p2114_p3) target bundleno = 24 (0x18), region = 24  ;;  %s154_s22 = sand.u32 (%p2114_p3), 1, %s2046_s13  }
   0xd   : > { %s1852_s23 = sshll.u32 (%p2114_p3), %s2054_s15, 6  ;;  %s1544_s24 = sshll.u32 (%p2114_p3), %s154_s22, 5 }
   0xe   : > { %s160_s27 = scalar_lea.vmem (%p2114_p3), %s2740_s0, %s1852_s23  ;;  %s156_s28 = scalar_lea.vmem (%p2114_p3), [#allocation2], %s1544_s24 }
   0xf   : > { %v177_v0 = vld [vmem:[%s160_s27] sm:$0xf] (%p2114_p3)  ;;  %v179_v1 = vld [vmem:[%s160_s27 + $0x8] sm:$0xf] (%p2114_p3)  ;;  %v181_v2 = vld [vmem:[%s160_s27 + $0x10] sm:$0xf] (%p2114_p3) }
  0x10   : > { %178 = vst [vmem:[%s156_s28] sm:$0xf] (%p2114_p3), %v177_v0  ;;  %v183_v3 = vld [vmem:[%s160_s27 + $0x18] sm:$0xf] (%p2114_p3)  ;;  %v185_v4 = vld [vmem:[%s160_s27 + $0x20] sm:$0xf] (%p2114_p3) }
  0x11   : > { %180 = vst [vmem:[%s156_s28 + $0x4] sm:$0xf] %v179_v1  ;;  %v187_v5 = vld [vmem:[%s160_s27 + $0x28] sm:$0xf]  ;;  %v189_v6 = vld [vmem:[%s160_s27 + $0x30] sm:$0xf] }
  0x12   : > { %182 = vst [vmem:[%s156_s28 + $0x8] sm:$0xf] %v181_v2  ;;  %v191_v7 = vld [vmem:[%s160_s27 + $0x38] sm:$0xf] }
  0x13   : > { %184 = vst [vmem:[%s156_s28 + $0xc] sm:$0xf] %v183_v3 }
  0x14   : > { %186 = vst [vmem:[%s156_s28 + $0x10] sm:$0xf] %v185_v4 }
  0x15   : > { %188 = vst [vmem:[%s156_s28 + $0x14] sm:$0xf] %v187_v5 }
  0x16   : > { %190 = vst [vmem:[%s156_s28 + $0x18] sm:$0xf] %v189_v6 }
  0x17   : > { %192 = vst [vmem:[%s156_s28 + $0x1c] sm:$0xf] %v191_v7 }
  0x18 PF: > { %232 = sbr.rel (!%p2114_p3) target bundleno = 36 (0x24), region = 65  ;;  %s234_s29 = sand.u32 (%p2114_p3), 1, %s2046_s13  }
  0x19   : > { %s1853_s30 = sshll.u32 (%p2114_p3), %s2054_s15, 6  ;;  %s1547_s4 = sshll.u32 (%p2114_p3), %s234_s29, 5 }
  0x1a   : > { %s1472_s7 = scalar_lea.vmem (%p2114_p3), %s2741_s1, %s1853_s30  ;;  %s236_s8 = scalar_lea.vmem (%p2114_p3), [#allocation3], %s1547_s4 }
  0x1b   : > { %v1550_v8 = vld [vmem:[%s1472_s7 + $0x4] sm:$0xf] (%p2114_p3)  ;;  %v1551_v9 = vld [vmem:[%s1472_s7 + $0xc] sm:$0xf] (%p2114_p3)  ;;  %v1552_v10 = vld [vmem:[%s1472_s7 + $0x14] sm:$0xf] (%p2114_p3) }
  0x1c   : > { %259 = vst [vmem:[%s236_s8] sm:$0xf] (%p2114_p3), %v1550_v8  ;;  %v1553_v11 = vld [vmem:[%s1472_s7 + $0x1c] sm:$0xf] (%p2114_p3)  ;;  %v1554_v12 = vld [vmem:[%s1472_s7 + $0x24] sm:$0xf] (%p2114_p3) }
  0x1d   : > { %261 = vst [vmem:[%s236_s8 + $0x4] sm:$0xf] %v1551_v9  ;;  %v1555_v13 = vld [vmem:[%s1472_s7 + $0x2c] sm:$0xf]  ;;  %v1556_v14 = vld [vmem:[%s1472_s7 + $0x34] sm:$0xf] }
  0x1e   : > { %263 = vst [vmem:[%s236_s8 + $0x8] sm:$0xf] %v1552_v10  ;;  %v1557_v15 = vld [vmem:[%s1472_s7 + $0x3c] sm:$0xf] }
  0x1f   : > { %265 = vst [vmem:[%s236_s8 + $0xc] sm:$0xf] %v1553_v11 }
  0x20   : > { %267 = vst [vmem:[%s236_s8 + $0x10] sm:$0xf] %v1554_v12 }
  0x21   : > { %269 = vst [vmem:[%s236_s8 + $0x14] sm:$0xf] %v1555_v13 }
  0x22   : > { %271 = vst [vmem:[%s236_s8 + $0x18] sm:$0xf] %v1556_v14 }
  0x23   : > { %273 = vst [vmem:[%s236_s8 + $0x1c] sm:$0xf] %v1557_v15 }
  0x24 PF: > { %p1558_p6 = scmp.ge.s32.totalorder %s2058_s16, 1  ;;  %p312_p7 = scmp.lt.s32.totalorder %s2058_s16, 3 }
  0x26   : > { %p313_p8 = pnand %p1558_p6, %p312_p7 }
  0x27   : > { %s319_s9 = sand.u32 (!%p313_p8), 1, %s2042_s12   ;;  %s2060_s18 = smov (!%p313_p8), 125  }
  0x28   : > { %316 = sbr.rel (%p313_p8) target bundleno = 605 (0x25d), region = 106  ;;  %s1559_s10 = sshll.u32 (!%p313_p8), %s319_s9, 5 }
  0x29   : > { %s321_s11 = scalar_lea.vmem (!%p313_p8), [#allocation2], %s1559_s10  ;;  %s2061_s19 = smov (!%p313_p8), 127  }
  0x2a   : > { %s328_s20 = scalar_lea.vmem (!%p313_p8), [#allocation3], %s1559_s10  ;;  %s2062_s12 = smov (!%p313_p8), 126  }
  0x2b   : > { %p357_p9 = scmp.lt.s32.totalorder (!%p313_p8), %s2050_s14, 1 }
  0x2d   : > { %v2142_v16 = vld [vmem:[%s321_s11 + $0x18] sm:$0xff]  ;;  %v2144_v17 = vld [vmem:[%s321_s11 + $0x10] sm:$0xff]  ;;  %v2149_v20 = vld [vmem:[%s321_s11 + $0x8] sm:$0xff]  ;;  %vm491_vm0 = vcmask 1022976   ;;  %vm441_vm1 = vcmask 1039360   ;;  %vm466_vm2 = vcmask 1031168  }
  0x2e   : > { %487 = vrot.lane.b32.xlu1 %v2142_v16, %s2060_s18  ;;  %437 = vrot.lane.b32.xlu0 %v2142_v16, %s2061_s19  ;;  %v1861_v18 = vld [vmem:[%s328_s20 + $0x18] sm:$0xff]  ;;  %v1860_v19 = vld [vmem:[%s328_s20 + $0x10] sm:$0xff]  ;;  %s2752_s14 = smov (!%p357_p9, %s2050_s14), 1 }
  0x2f   : > { %433 = vrot.lane.b32.xlu2 %v2144_v17, %s2061_s19  ;;  %v1859_v21 = vld [vmem:[%s328_s20 + $0x8] sm:$0xff]  ;;  %v1858_v22 = vld [vmem:[%s328_s20] sm:$0xff]  ;;  %v1732_v8 = vld [vmem:[%s2742_s2 + $0x110] sm:$0xf]  ;;  %s1942_s22 = smul.u32 136, %s2752_s14 }
  0x30   : > { %v2154_v23 = vld [vmem:[%s321_s11] sm:$0xff]  ;;  %v1895_v53 = vld [vmem:[%s2742_s2 + $0x104] sm:$0xf0]  ;;  %v1598_v2 = vld [vmem:[%s2742_s2 + $0x8] sm:$0xf0] }
  0x31   : > { %v1724_v52 = vld [vmem:[%s2742_s2 + $0x100] sm:$0xf]  ;;  %v1863_v55 = vld [vmem:[%s2742_s2 + $0x4] sm:$0xf0]  ;;  %v1862_v1 = vld [vmem:[%s2742_s2 + $0x4] sm:$0xf]  ;;  %s2463_s5 = scalar_lea.vmem %s2743_s3, %s1942_s22 }
  0x32   : > { %v1596_v54 = vld [vmem:[%s2742_s2] sm:$0xf]  ;;  %v1725_v59 = vor.u32 %v1895_v53, %v1724_v52  ;;  %v1894_v3 = vld [vmem:[%s2742_s2 + $0x104] sm:$0xf]  ;;  %v1726_v4 = vld [vmem:[%s2742_s2 + $0x108] sm:$0xf0]  ;;  %v1601_v6 = vor.u32 %v1862_v1, %v1598_v2 }
  0x33   : > { %v1597_v60 = vor.u32 %v1863_v55, %v1596_v54  ;;  %v1729_v7 = vor.u32 %v1894_v3, %v1726_v4  ;;  %v1897_v9 = vld [vmem:[%s2742_s2 + $0x114] sm:$0xf0]  ;;  %v1604_v10 = vld [vmem:[%s2742_s2 + $0x10] sm:$0xf]  ;;  %v1864_v14 = vld [vmem:[%s2742_s2 + $0x14] sm:$0xf] }
  0x34   : > { %v1865_v11 = vld [vmem:[%s2742_s2 + $0x14] sm:$0xf0]  ;;  %v1733_v12 = vor.u32 %v1897_v9, %v1732_v8  ;;  %v1606_v15 = vld [vmem:[%s2742_s2 + $0x18] sm:$0xf0]  ;;  %v1902_v52 = vld [vmem:[%s2742_s2 + $0x144] sm:$0xf] }
  0x35   : > { %v1605_v13 = vor.u32 %v1865_v11, %v1604_v10  ;;  %v1758_v53 = vld [vmem:[%s2742_s2 + $0x148] sm:$0xf0]  ;;  %v1766_v1 = vld [vmem:[%s2742_s2 + $0x158] sm:$0xf0]  ;;  %v1772_v4 = vld [vmem:[%s2742_s2 + $0x160] sm:$0xf] }
  0x36   : > { %489 = vrot.lane.b32.xlu1 %v1861_v18, %s2060_s18  ;;  %439 = vrot.lane.b32.xlu0 %v1861_v18, %s2061_s19  ;;  %v1761_v55 = vor.u32 %v1902_v52, %v1758_v53  ;;  %v1874_v10 = vld [vmem:[%s2742_s2 + $0x64] sm:$0xf]  ;;  %v1646_v11 = vld [vmem:[%s2742_s2 + $0x68] sm:$0xf0] }
  0x37   : > { %435 = vrot.lane.b32.xlu2 %v1860_v19, %s2061_s19 }
  0x3e   : > { %485 = vrot.lane.b32.xlu1 %v1860_v19, %s2060_s18  ;;  %483 = vrot.lane.b32.xlu0 %v2144_v17, %s2060_s18 }
  0x3f   : > { %429 = vrot.lane.b32.xlu2 %v2149_v20, %s2061_s19 }
  0x46   : > { %431 = vrot.lane.b32.xlu0 %v1859_v21, %s2061_s19  ;;  %479 = vrot.lane.b32.xlu1 %v2149_v20, %s2060_s18 }
  0x47   : > { %481 = vrot.lane.b32.xlu2 %v1859_v21, %s2060_s18 }
  0x4e   : > { %427 = vrot.lane.b32.xlu1 %v1858_v22, %s2061_s19  ;;  %425 = vrot.lane.b32.xlu0 %v2154_v23, %s2061_s19 }
  0x4f   : > { %475 = vrot.lane.b32.xlu2 %v2154_v23, %s2060_s18 }
  0x56   : > { %462 = vrot.lane.b32.xlu1 %v2142_v16, %s2062_s12  ;;  %477 = vrot.lane.b32.xlu0 %v1858_v22, %s2060_s18 }
  0x57   : > { %464 = vrot.lane.b32.xlu2 %v1861_v18, %s2062_s12  ;;  %v1609_v18 = vor.u32 %v1864_v14, %v1606_v15  ;;  %v1649_v14 = vor.u32 %v1874_v10, %v1646_v11  ;;  %v1915_v10 = vld [vmem:[%s2742_s2 + $0x1a4] sm:$0xf0]  ;;  %v1676_v11 = vld [vmem:[%s2742_s2 + $0xa0] sm:$0xf] }
  0x5e   : > { %460 = vrot.lane.b32.xlu1 %v1860_v19, %s2062_s12  ;;  %458 = vrot.lane.b32.xlu0 %v2144_v17, %s2062_s12 }
  0x5f   : > { %454 = vrot.lane.b32.xlu2 %v2149_v20, %s2062_s12 }
  0x66   : > { %456 = vrot.lane.b32.xlu0 %v1859_v21, %s2062_s12  ;;  %450 = vrot.lane.b32.xlu1 %v2154_v23, %s2062_s12  ;;  %v1899_v21 = vld [vmem:[%s2742_s2 + $0x124] sm:$0xf0] }
  0x67   : > { %452 = vrot.lane.b32.xlu2 %v1858_v22, %s2062_s12  ;;  %v1612_v22 = vld [vmem:[%s2742_s2 + $0x20] sm:$0xf] }
  0x89   : > { %v434_v24 = vpop.permute.xlu2 %433 }
  0x91   : > { %v436_v25 = vpop.permute.xlu2 %435 }
  0x92   : > { %v444_v33 = vsel %vm441_vm1, %v434_v24, %v436_v25 }
  0x99   : > { %v430_v28 = vpop.permute.xlu2 %429 }
  0xa0   : > { %v488_v26 = vpop.permute.xlu1 %487  ;;  %v438_v27 = vpop.permute.xlu0 %437 }
  0xa1   : > { %v482_v34 = vpop.permute.xlu2 %481 }
  0xa8   : > { %v490_v29 = vpop.permute.xlu1 %489  ;;  %v440_v30 = vpop.permute.xlu0 %439 }
  0xa9   : > { %v445_v31 = vsel %vm441_vm1, %v438_v27, %v440_v30  ;;  %v495_v32 = vsel %vm491_vm0, %v488_v26, %v490_v29  ;;  %v476_v42 = vpop.permute.xlu2 %475  ;;  %v1866_v26 = vld [vmem:[%s2742_s2 + $0x24] sm:$0xf]  ;;  %v1614_v27 = vld [vmem:[%s2742_s2 + $0x28] sm:$0xf0] }
  0xaa   : > { %884 = vmatpush.bf16.msra.mxu0 %v445_v31  ;;  %1926 = vmatpush.bf16.msra.mxu2 %v445_v31  ;;  %v1742_v29 = vld [vmem:[%s2742_s2 + $0x128] sm:$0xf0]  ;;  %v1617_v30 = vor.u32 %v1866_v26, %v1614_v27 }
  0xab   : > { %1023 = vmatpush.bf16.msra.mxu1 %v495_v32  ;;  %1934 = vmatpush.bf16.msra.mxu3 %v495_v32  ;;  %v1748_v32 = vld [vmem:[%s2742_s2 + $0x130] sm:$0xf] }
  0xae   : > { %885 = vmatpush.bf16.msra.mxu0 %v444_v33  ;;  %1927 = vmatpush.bf16.msra.mxu2 %v444_v33  ;;  %v1901_v33 = vld [vmem:[%s2742_s2 + $0x134] sm:$0xf0] }
  0xb0   : > { %v486_v35 = vpop.permute.xlu1 %485  ;;  %v484_v36 = vpop.permute.xlu0 %483 }
  0xb1   : > { %v494_v37 = vsel %vm491_vm0, %v484_v36, %v486_v35  ;;  %v465_v46 = vpop.permute.xlu2 %464  ;;  %v1869_v35 = vld [vmem:[%s2742_s2 + $0x34] sm:$0xf0]  ;;  %v1749_v36 = vor.u32 %v1901_v33, %v1748_v32 }
  0xb2   : > { %1024 = vmatpush.bf16.msra.mxu1 %v494_v37  ;;  %1935 = vmatpush.bf16.msra.mxu3 %v494_v37 }
  0xb8   : > { %v432_v38 = vpop.permute.xlu0 %431  ;;  %v480_v39 = vpop.permute.xlu1 %479 }
  0xb9   : > { %v443_v40 = vsel %vm441_vm1, %v430_v28, %v432_v38  ;;  %v493_v41 = vsel %vm491_vm0, %v480_v39, %v482_v34  ;;  %v455_v51 = vpop.permute.xlu2 %454  ;;  %v1898_v28 = vld [vmem:[%s2742_s2 + $0x124] sm:$0xf]  ;;  %v1620_v34 = vld [vmem:[%s2742_s2 + $0x30] sm:$0xf]  ;;  %v1868_v38 = vld [vmem:[%s2742_s2 + $0x34] sm:$0xf] }
  0xba   : > { %886 = vmatpush.bf16.msra.mxu0 %v443_v40  ;;  %1928 = vmatpush.bf16.msra.mxu2 %v443_v40  ;;  %v1745_v31 = vor.u32 %v1898_v28, %v1742_v29  ;;  %v1621_v37 = vor.u32 %v1869_v35, %v1620_v34  ;;  %v1622_v39 = vld [vmem:[%s2742_s2 + $0x38] sm:$0xf0]  ;;  %v1900_v40 = vld [vmem:[%s2742_s2 + $0x134] sm:$0xf]  ;;  %v1788_v28 = vld [vmem:[%s2742_s2 + $0x180] sm:$0xf] }
  0xbb   : > { %1025 = vmatpush.bf16.msra.mxu1 %v493_v41  ;;  %1936 = vmatpush.bf16.msra.mxu3 %v493_v41  ;;  %v1750_v41 = vld [vmem:[%s2742_s2 + $0x138] sm:$0xf0]  ;;  %v1911_v29 = vld [vmem:[%s2742_s2 + $0x184] sm:$0xf0] }
  0xbc   : > { %v1789_v32 = vor.u32 %v1911_v29, %v1788_v28 }
  0xc0   : > { %v428_v43 = vpop.permute.xlu1 %427  ;;  %v426_v44 = vpop.permute.xlu0 %425 }
  0xc1   : > { %v442_v45 = vsel %vm441_vm1, %v426_v44, %v428_v43  ;;  %v453_v61 = vpop.permute.xlu2 %452  ;;  %v1753_v43 = vor.u32 %v1900_v40, %v1750_v41  ;;  %v1756_v44 = vld [vmem:[%s2742_s2 + $0x140] sm:$0xf] }
  0xc2   : > { %887 = vmatpush.bf16.msra.mxu0 %v442_v45  ;;  %1929 = vmatpush.bf16.msra.mxu2 %v442_v45  ;;  %v1903_v45 = vld [vmem:[%s2742_s2 + $0x144] sm:$0xf0] }
  0xc6   : > { %1930 = vmatpush.bf16.msra.mxu2 %v2142_v16  ;;  %888 = vmatpush.bf16.msra.mxu0 %v2142_v16  ;;  %v1896_v16 = vld [vmem:[%s2742_s2 + $0x114] sm:$0xf] }
  0xc8   : > { %v463_v47 = vpop.permute.xlu1 %462  ;;  %v478_v48 = vpop.permute.xlu0 %477 }
  0xc9   : > { %v492_v49 = vsel %vm491_vm0, %v476_v42, %v478_v48  ;;  %v470_v50 = vsel %vm466_vm2, %v463_v47, %v465_v46  ;;  %v1625_v42 = vor.u32 %v1868_v38, %v1622_v39  ;;  %v1628_v46 = vld [vmem:[%s2742_s2 + $0x40] sm:$0xf]  ;;  %v1871_v47 = vld [vmem:[%s2742_s2 + $0x44] sm:$0xf0]  ;;  %v1757_v48 = vor.u32 %v1903_v45, %v1756_v44  ;;  %v1910_v38 = vld [vmem:[%s2742_s2 + $0x184] sm:$0xf] }
  0xca   : > { %1026 = vmatpush.bf16.msra.mxu1 %v492_v49  ;;  %1937 = vmatpush.bf16.msra.mxu3 %v492_v49  ;;  %v1629_v49 = vor.u32 %v1871_v47, %v1628_v46  ;;  %v1790_v39 = vld [vmem:[%s2742_s2 + $0x188] sm:$0xf0]  ;;  %v1796_v44 = vld [vmem:[%s2742_s2 + $0x190] sm:$0xf]  ;;  %v1913_v45 = vld [vmem:[%s2742_s2 + $0x194] sm:$0xf0] }
  0xcb   : > { %1931 = vmatpush.bf16.msra.mxu2 %v2144_v17  ;;  %889 = vmatpush.bf16.msra.mxu0 %v2144_v17  ;;  %v1734_v17 = vld [vmem:[%s2742_s2 + $0x118] sm:$0xf0]  ;;  %v1668_v46 = vld [vmem:[%s2742_s2 + $0x90] sm:$0xf]  ;;  %v1881_v47 = vld [vmem:[%s2742_s2 + $0x94] sm:$0xf0] }
  0xcc   : > { %v1737_v19 = vor.u32 %v1896_v16, %v1734_v17  ;;  %v1780_v16 = vld [vmem:[%s2742_s2 + $0x170] sm:$0xf]  ;;  %v1909_v17 = vld [vmem:[%s2742_s2 + $0x174] sm:$0xf0] }
  0xce   : > { %1027 = vmatpush.bf16.msra.mxu1 %v470_v50  ;;  %1938 = vmatpush.bf16.msra.mxu3 %v470_v50  ;;  %v1870_v50 = vld [vmem:[%s2742_s2 + $0x44] sm:$0xf] }
  0xcf   : > { %1932 = vmatpush.bf16.msra.mxu2 %v2149_v20  ;;  %890 = vmatpush.bf16.msra.mxu0 %v2149_v20  ;;  %v1740_v20 = vld [vmem:[%s2742_s2 + $0x120] sm:$0xf] }
  0xd0   : > { %v461_v56 = vpop.permute.xlu1 %460  ;;  %v459_v57 = vpop.permute.xlu0 %458  ;;  %v1741_v24 = vor.u32 %v1899_v21, %v1740_v20  ;;  %v1781_v20 = vor.u32 %v1909_v17, %v1780_v16 }
  0xd1   : > { %v469_v58 = vsel %vm466_vm2, %v459_v57, %v461_v56  ;;  %v1764_v56 = vld [vmem:[%s2742_s2 + $0x150] sm:$0xf]  ;;  %v1905_v57 = vld [vmem:[%s2742_s2 + $0x154] sm:$0xf0] }
  0xd2   : > { %1028 = vmatpush.bf16.msra.mxu1 %v469_v58  ;;  %1939 = vmatpush.bf16.msra.mxu3 %v469_v58  ;;  %v1636_v58 = vld [vmem:[%s2742_s2 + $0x50] sm:$0xf] }
  0xd3   : > { %1933 = vmatpush.bf16.msra.mxu2 %v2154_v23  ;;  %891 = vmatpush.bf16.msra.mxu0 %v2154_v23  ;;  %v1867_v23 = vld [vmem:[%s2742_s2 + $0x24] sm:$0xf0] }
  0xd4   : > { %v1613_v25 = vor.u32 %v1867_v23, %v1612_v22  ;;  %v1876_v22 = vld [vmem:[%s2742_s2 + $0x74] sm:$0xf]  ;;  %v1654_v23 = vld [vmem:[%s2742_s2 + $0x78] sm:$0xf0] }
  0xd5   : > { %v1657_v26 = vor.u32 %v1876_v22, %v1654_v23 }
  0xd6   : > { %957 = vmatmul.bf16.vlgmr.msra.gmra.mxu2 %v1725_v59  ;;  %892 = vmatmul.bf16.vlgmr.msra.gmra.mxu0 %v1597_v60  ;;  %v1873_v59 = vld [vmem:[%s2742_s2 + $0x54] sm:$0xf0]  ;;  %v1765_v60 = vor.u32 %v1905_v57, %v1764_v56 }
  0xd8   : > { %v457_v62 = vpop.permute.xlu0 %456  ;;  %v451_v63 = vpop.permute.xlu1 %450 }
  0xd9   : > { %v468_v0 = vsel %vm466_vm2, %v455_v51, %v457_v62  ;;  %v467_v5 = vsel %vm466_vm2, %v451_v63, %v453_v61  ;;  %v1630_v51 = vld [vmem:[%s2742_s2 + $0x48] sm:$0xf0]  ;;  %v1637_v61 = vor.u32 %v1873_v59, %v1636_v58  ;;  %v1872_v62 = vld [vmem:[%s2742_s2 + $0x54] sm:$0xf]  ;;  %v1638_v63 = vld [vmem:[%s2742_s2 + $0x58] sm:$0xf0] }
  0xda   : > { %1029 = vmatpush.bf16.msra.mxu1 %v468_v0  ;;  %1940 = vmatpush.bf16.msra.mxu3 %v468_v0  ;;  %v1633_v54 = vor.u32 %v1870_v50, %v1630_v51  ;;  %v1904_v0 = vld [vmem:[%s2742_s2 + $0x154] sm:$0xf]  ;;  %v1641_v2 = vor.u32 %v1872_v62, %v1638_v63  ;;  %v1797_v50 = vor.u32 %v1913_v45, %v1796_v44  ;;  %v1798_v63 = vld [vmem:[%s2742_s2 + $0x198] sm:$0xf0] }
  0xdb   : > { %v1769_v3 = vor.u32 %v1904_v0, %v1766_v1  ;;  %v1669_v51 = vor.u32 %v1881_v47, %v1668_v46  ;;  %v1912_v62 = vld [vmem:[%s2742_s2 + $0x194] sm:$0xf] }
  0xde   : > { %1030 = vmatpush.bf16.msra.mxu1 %v467_v5  ;;  %1941 = vmatpush.bf16.msra.mxu3 %v467_v5  ;;  %v1907_v5 = vld [vmem:[%s2742_s2 + $0x164] sm:$0xf0] }
  0xdf   : > { %v1773_v8 = vor.u32 %v1907_v5, %v1772_v4  ;;  %v1801_v5 = vor.u32 %v1912_v62, %v1798_v63 }
  0xe1   : > { %1031 = vmatmul.bf16.vlgmr.msra.gmra.mxu1 %v1601_v6  ;;  %1096 = vmatmul.bf16.vlgmr.msra.gmra.mxu3 %v1729_v7  ;;  %v1644_v6 = vld [vmem:[%s2742_s2 + $0x60] sm:$0xf]  ;;  %v1875_v7 = vld [vmem:[%s2742_s2 + $0x64] sm:$0xf0] }
  0xe2   : > { %v1645_v9 = vor.u32 %v1875_v7, %v1644_v6  ;;  %v1804_v7 = vld [vmem:[%s2742_s2 + $0x1a0] sm:$0xf] }
  0xe6   : > { %962 = vmatmul.bf16.gmra.mxu2 %v1733_v12  ;;  %897 = vmatmul.bf16.gmra.mxu0 %v1605_v13  ;;  %v1906_v12 = vld [vmem:[%s2742_s2 + $0x164] sm:$0xf]  ;;  %v1774_v13 = vld [vmem:[%s2742_s2 + $0x168] sm:$0xf0] }
  0xe7   : > { %v1777_v15 = vor.u32 %v1906_v12, %v1774_v13  ;;  %v1883_v12 = vld [vmem:[%s2742_s2 + $0xa4] sm:$0xf0] }
  0xf1   : > { %1036 = vmatmul.bf16.gmra.mxu1 %v1609_v18  ;;  %1101 = vmatmul.bf16.gmra.mxu3 %v1737_v19  ;;  %v1652_v18 = vld [vmem:[%s2742_s2 + $0x70] sm:$0xf]  ;;  %v1877_v19 = vld [vmem:[%s2742_s2 + $0x74] sm:$0xf0] }
  0xf2   : > { %v1653_v21 = vor.u32 %v1877_v19, %v1652_v18  ;;  %v1805_v18 = vor.u32 %v1915_v10, %v1804_v7  ;;  %v1677_v19 = vor.u32 %v1883_v12, %v1676_v11 }
  0xf6   : > { %967 = vmatmul.bf16.gmra.mxu2 %v1741_v24  ;;  %902 = vmatmul.bf16.gmra.mxu0 %v1613_v25  ;;  %v1908_v24 = vld [vmem:[%s2742_s2 + $0x174] sm:$0xf]  ;;  %v1782_v25 = vld [vmem:[%s2742_s2 + $0x178] sm:$0xf0] }
  0xf7   : > { %v1785_v27 = vor.u32 %v1908_v24, %v1782_v25 }
 0x101   : > { %1041 = vmatmul.bf16.gmra.mxu1 %v1617_v30  ;;  %1106 = vmatmul.bf16.gmra.mxu3 %v1745_v31  ;;  %v1660_v30 = vld [vmem:[%s2742_s2 + $0x80] sm:$0xf]  ;;  %v1879_v31 = vld [vmem:[%s2742_s2 + $0x84] sm:$0xf0] }
 0x102   : > { %v1661_v33 = vor.u32 %v1879_v31, %v1660_v30 }
 0x106   : > { %972 = vmatmul.bf16.gmra.mxu2 %v1749_v36  ;;  %907 = vmatmul.bf16.gmra.mxu0 %v1621_v37  ;;  %v1878_v36 = vld [vmem:[%s2742_s2 + $0x84] sm:$0xf]  ;;  %v1662_v37 = vld [vmem:[%s2742_s2 + $0x88] sm:$0xf0] }
 0x107   : > { %v1665_v41 = vor.u32 %v1878_v36, %v1662_v37  ;;  %v1914_v36 = vld [vmem:[%s2742_s2 + $0x1a4] sm:$0xf]  ;;  %v1806_v37 = vld [vmem:[%s2742_s2 + $0x1a8] sm:$0xf0] }
 0x108   : > { %v1809_v46 = vor.u32 %v1914_v36, %v1806_v37  ;;  %v1820_v37 = vld [vmem:[%s2742_s2 + $0x1c0] sm:$0xf] }
 0x111   : > { %1046 = vmatmul.bf16.gmra.mxu1 %v1625_v42  ;;  %1111 = vmatmul.bf16.gmra.mxu3 %v1753_v43  ;;  %v1793_v42 = vor.u32 %v1910_v38, %v1790_v39 }
 0x116   : > { %977 = vmatmul.bf16.gmra.mxu2 %v1757_v48  ;;  %912 = vmatmul.bf16.gmra.mxu0 %v1629_v49 }
 0x121   : > { %1051 = vmatmul.bf16.gmra.mxu1 %v1633_v54  ;;  %1116 = vmatmul.bf16.gmra.mxu3 %v1761_v55 }
 0x126   : > { %982 = vmatmul.bf16.gmra.mxu2 %v1765_v60  ;;  %917 = vmatmul.bf16.gmra.mxu0 %v1637_v61  ;;  %v1880_v60 = vld [vmem:[%s2742_s2 + $0x94] sm:$0xf]  ;;  %v1670_v61 = vld [vmem:[%s2742_s2 + $0x98] sm:$0xf0] }
 0x127   : > { %v1673_v4 = vor.u32 %v1880_v60, %v1670_v61 }
 0x131   : > { %1056 = vmatmul.bf16.gmra.mxu1 %v1641_v2  ;;  %1121 = vmatmul.bf16.gmra.mxu3 %v1769_v3 }
 0x136   : > { %987 = vmatmul.bf16.gmra.mxu2 %v1773_v8  ;;  %922 = vmatmul.bf16.gmra.mxu0 %v1645_v9 }
 0x141   : > { %1061 = vmatmul.bf16.gmra.mxu1 %v1649_v14  ;;  %1126 = vmatmul.bf16.gmra.mxu3 %v1777_v15 }
 0x146   : > { %992 = vmatmul.bf16.gmra.mxu2 %v1781_v20  ;;  %927 = vmatmul.bf16.gmra.mxu0 %v1653_v21 }
 0x151   : > { %1066 = vmatmul.bf16.gmra.mxu1 %v1657_v26  ;;  %1131 = vmatmul.bf16.gmra.mxu3 %v1785_v27 }
 0x153   : > { %v893_v34 = vpop.f32.mrf.mxu0 }
 0x156   : > { %997 = vmatmul.bf16.gmra.mxu2 %v1789_v32  ;;  %932 = vmatmul.bf16.gmra.mxu0 %v1661_v33  ;;  %v1882_v32 = vld [vmem:[%s2742_s2 + $0xa4] sm:$0xf]  ;;  %v1678_v33 = vld [vmem:[%s2742_s2 + $0xa8] sm:$0xf0] }
 0x159   : > { %v958_v35 = vpop.f32.mrf.mxu2 }
 0x15b   : > { %v895_v40 = vpop.f32.mrf.mxu0 }
 0x15e   : > { %v1032_v43 = vpop.f32.mrf.mxu1 }
 0x15f   : > { %v1033_v48 = vadd.f32 %v1032_v43, %v893_v34  ;;  %v1681_v43 = vor.u32 %v1882_v32, %v1678_v33 }
 0x161   : > { %1071 = vmatmul.bf16.gmra.mxu1 %v1665_v41  ;;  %1136 = vmatmul.bf16.gmra.mxu3 %v1793_v42  ;;  %v960_v49 = vpop.f32.mrf.mxu2  ;;  %v1162_v54 = vmul.f32 %v1033_v48, %v1033_v48 }
 0x163   : > { %v898_v52 = vpop.f32.mrf.mxu0 }
 0x164   : > { %v1097_v53 = vpop.f32.mrf.mxu3 }
 0x165   : > { %v1098_v55 = vadd.f32 %v1097_v53, %v958_v35 }
 0x166   : > { %v1034_v56 = vpop.f32.mrf.mxu1  ;;  %1001 = vmatmul.bf16.gmra.mxu2 %v1797_v50  ;;  %936 = vmatmul.bf16.gmra.mxu0 %v1669_v51  ;;  %v1812_v50 = vld [vmem:[%s2742_s2 + $0x1b0] sm:$0xf] }
 0x167   : > { %v1179_v57 = vmul.f32 %v1098_v55, %v1098_v55  ;;  %v1035_v0 = vadd.f32 %v1034_v56, %v895_v40  ;;  %v1684_v55 = vld [vmem:[%s2742_s2 + $0xb0] sm:$0xf]  ;;  %v1885_v56 = vld [vmem:[%s2742_s2 + $0xb4] sm:$0xf0] }
 0x169   : > { %v2410_v58 = vadd.f32 %v1179_v57, %v1162_v54  ;;  %v963_v59 = vpop.f32.mrf.mxu2  ;;  %v1163_v8 = vmul.f32 %v1035_v0, %v1035_v0  ;;  %v1917_v54 = vld [vmem:[%s2742_s2 + $0x1b4] sm:$0xf0] }
 0x16a   : > { %v1813_v0 = vor.u32 %v1917_v54, %v1812_v50 }
 0x16b   : > { %1986 = vrsqrt.f32 %v2410_v58  ;;  %v900_v1 = vpop.f32.mrf.mxu0  ;;  %vm1220_vm3 = vcmp.eq.f32.partialorder %v2410_v58, inf  ;;  %v1223_v44 = vand.u32 2147483648, %v2410_v58  ;;  %vm1222_vm4 = vcmp.eq.f32.partialorder %v2410_v58, 0.0 }
 0x16c   : > { %v1099_v2 = vpop.f32.mrf.mxu3 }
 0x16d   : > { %v1100_v3 = vadd.f32 %v1099_v2, %v960_v49 }
 0x16e   : > { %v1037_v6 = vpop.f32.mrf.mxu1 }
 0x16f   : > { %v1180_v9 = vmul.f32 %v1100_v3, %v1100_v3  ;;  %v1038_v15 = vadd.f32 %v1037_v6, %v898_v52 }
 0x171   : > { %v1987_v13 = vpop.eup %1986  ;;  %v2438_v14 = vadd.f32 %v1180_v9, %v1163_v8  ;;  %1075 = vmatmul.bf16.gmra.mxu1 %v1673_v4  ;;  %1140 = vmatmul.bf16.gmra.mxu3 %v1801_v5  ;;  %v965_v16 = vpop.f32.mrf.mxu2  ;;  %v1164_v23 = vmul.f32 %v1038_v15, %v1038_v15 }
 0x172   : > { %v1214_v17 = vmul.f32 %v1987_v13, %v2410_v58 }
 0x173   : > { %1988 = vrsqrt.f32 %v2438_v14  ;;  %v903_v20 = vpop.f32.mrf.mxu0  ;;  %vm1232_vm5 = vcmp.eq.f32.partialorder %v2438_v14, inf  ;;  %v1235_v6 = vand.u32 2147483648, %v2438_v14  ;;  %vm1234_vm6 = vcmp.eq.f32.partialorder %v2438_v14, 0.0 }
 0x174   : > { %v1215_v21 = vmul.f32 %v1987_v13, %v1214_v17  ;;  %v1102_v22 = vpop.f32.mrf.mxu3 }
 0x175   : > { %v1103_v24 = vadd.f32 %v1102_v22, %v963_v59  ;;  %v1916_v22 = vld [vmem:[%s2742_s2 + $0x1b4] sm:$0xf] }
 0x176   : > { %v1216_v25 = vmul.f32 0.5, %v1215_v21  ;;  %v1039_v26 = vpop.f32.mrf.mxu1  ;;  %1004 = vmatmul.bf16.gmra.mxu2 %v1805_v18  ;;  %939 = vmatmul.bf16.gmra.mxu0 %v1677_v19  ;;  %v1884_v19 = vld [vmem:[%s2742_s2 + $0xb4] sm:$0xf] }
 0x177   : > { %v1181_v27 = vmul.f32 %v1103_v24, %v1103_v24  ;;  %v1040_v38 = vadd.f32 %v1039_v26, %v900_v1  ;;  %v1685_v1 = vor.u32 %v1885_v56, %v1684_v55 }
 0x178   : > { %v1217_v28 = vsub.f32 1.5, %v1216_v25 }
 0x179   : > { %v1989_v29 = vpop.eup %1988  ;;  %v2443_v30 = vadd.f32 %v1181_v27, %v1164_v23  ;;  %v968_v31 = vpop.f32.mrf.mxu2  ;;  %v1165_v52 = vmul.f32 %v1040_v38, %v1040_v38  ;;  %v1814_v23 = vld [vmem:[%s2742_s2 + $0x1b8] sm:$0xf0] }
 0x17a   : > { %v1218_v34 = vmul.f32 %v1987_v13, %v1217_v28  ;;  %v1226_v35 = vmul.f32 %v1989_v29, %v2438_v14  ;;  %v1817_v33 = vor.u32 %v1916_v22, %v1814_v23  ;;  %v1828_v23 = vld [vmem:[%s2742_s2 + $0x1d0] sm:$0xf] }
 0x17b   : > { %1990 = vrsqrt.f32 %v2443_v30  ;;  %v905_v39 = vpop.f32.mrf.mxu0  ;;  %vm1244_vm7 = vcmp.eq.f32.partialorder %v2443_v30, inf  ;;  %vm1246_vm8 = vcmp.eq.f32.partialorder %v2443_v30, 0.0 }
 0x17c   : > { %v1219_v40 = vmul.f32 %v1218_v34, %v2410_v58  ;;  %v1227_v41 = vmul.f32 %v1989_v29, %v1226_v35  ;;  %v1104_v42 = vpop.f32.mrf.mxu3 }
 0x17d   : > { %v1105_v45 = vadd.f32 %v1104_v42, %v965_v16  ;;  %v1692_v42 = vld [vmem:[%s2742_s2 + $0xc0] sm:$0xf] }
 0x17e   : > { %v1221_v47 = vsel %vm1220_vm3, %v2410_v58, %v1219_v40  ;;  %v1228_v48 = vmul.f32 0.5, %v1227_v41  ;;  %v1042_v49 = vpop.f32.mrf.mxu1  ;;  %v1919_v41 = vld [vmem:[%s2742_s2 + $0x1c4] sm:$0xf0] }
 0x17f   : > { %v1224_v51 = vsel %vm1222_vm4, %v1223_v44, %v1221_v47  ;;  %v1182_v53 = vmul.f32 %v1105_v45, %v1105_v45  ;;  %v1043_v60 = vadd.f32 %v1042_v49, %v903_v20  ;;  %v1821_v50 = vor.u32 %v1919_v41, %v1820_v37 }
 0x180   : > { %1417 = vst [vmem:[%s2463_s5] sm:$0xff] %v1224_v51  ;;  %v1229_v57 = vsub.f32 1.5, %v1228_v48 }
 0x181   : > { %v1991_v58 = vpop.eup %1990  ;;  %v2482_v59 = vadd.f32 %v1182_v53, %v1165_v52  ;;  %1078 = vmatmul.bf16.gmra.mxu1 %v1681_v43  ;;  %1143 = vmatmul.bf16.gmra.mxu3 %v1809_v46  ;;  %v970_v61 = vpop.f32.mrf.mxu2  ;;  %v1166_v7 = vmul.f32 %v1043_v60, %v1043_v60 }
 0x182   : > { %v1230_v62 = vmul.f32 %v1989_v29, %v1229_v57  ;;  %v1238_v63 = vmul.f32 %v1991_v58, %v2443_v30 }
 0x183   : > { %1992 = vrsqrt.f32 %v2482_v59  ;;  %v908_v2 = vpop.f32.mrf.mxu0  ;;  %vm1256_vm9 = vcmp.eq.f32.partialorder %v2482_v59, inf  ;;  %v1259_v56 = vand.u32 2147483648, %v2482_v59  ;;  %vm1258_vm10 = vcmp.eq.f32.partialorder %v2482_v59, 0.0 }
 0x184   : > { %v1231_v3 = vmul.f32 %v1230_v62, %v2438_v14  ;;  %v1239_v4 = vmul.f32 %v1991_v58, %v1238_v63  ;;  %v1107_v5 = vpop.f32.mrf.mxu3 }
 0x185   : > { %v1108_v8 = vadd.f32 %v1107_v5, %v968_v31  ;;  %v1247_v31 = vand.u32 2147483648, %v2443_v30  ;;  %v1886_v5 = vld [vmem:[%s2742_s2 + $0xc4] sm:$0xf] }
 0x186   : > { %v1233_v9 = vsel %vm1232_vm5, %v2438_v14, %v1231_v3  ;;  %v1240_v10 = vmul.f32 0.5, %v1239_v4  ;;  %v1044_v11 = vpop.f32.mrf.mxu1  ;;  %1007 = vmatmul.bf16.gmra.mxu2 %v1813_v0  ;;  %942 = vmatmul.bf16.gmra.mxu0 %v1685_v1  ;;  %v1686_v14 = vld [vmem:[%s2742_s2 + $0xb8] sm:$0xf0] }
 0x187   : > { %v1236_v12 = vsel %vm1234_vm6, %v1235_v6, %v1233_v9  ;;  %v1183_v13 = vmul.f32 %v1108_v8, %v1108_v8  ;;  %v1045_v24 = vadd.f32 %v1044_v11, %v905_v39  ;;  %v1689_v29 = vor.u32 %v1884_v19, %v1686_v14  ;;  %v1918_v8 = vld [vmem:[%s2742_s2 + $0x1c4] sm:$0xf]  ;;  %v1822_v9 = vld [vmem:[%s2742_s2 + $0x1c8] sm:$0xf0] }
 0x188   : > { %1418 = vst [vmem:[%s2463_s5 + $0x8] sm:$0xff] %v1236_v12  ;;  %v1241_v15 = vsub.f32 1.5, %v1240_v10  ;;  %v1825_v14 = vor.u32 %v1918_v8, %v1822_v9  ;;  %v1836_v9 = vld [vmem:[%s2742_s2 + $0x1e0] sm:$0xf] }
 0x189   : > { %v1993_v16 = vpop.eup %1992  ;;  %v2492_v17 = vadd.f32 %v1183_v13, %v1166_v7  ;;  %v973_v18 = vpop.f32.mrf.mxu2  ;;  %v1167_v39 = vmul.f32 %v1045_v24, %v1045_v24 }
 0x18a   : > { %v1242_v20 = vmul.f32 %v1991_v58, %v1241_v15  ;;  %v1250_v21 = vmul.f32 %v1993_v16, %v2482_v59 }
 0x18b   : > { %1994 = vrsqrt.f32 %v2492_v17  ;;  %v910_v25 = vpop.f32.mrf.mxu0  ;;  %vm1268_vm11 = vcmp.eq.f32.partialorder %v2492_v17, inf  ;;  %vm1270_vm12 = vcmp.eq.f32.partialorder %v2492_v17, 0.0 }
 0x18c   : > { %v1243_v26 = vmul.f32 %v1242_v20, %v2443_v30  ;;  %v1251_v27 = vmul.f32 %v1993_v16, %v1250_v21  ;;  %v1109_v28 = vpop.f32.mrf.mxu3 }
 0x18d   : > { %v1110_v32 = vadd.f32 %v1109_v28, %v970_v61  ;;  %v1700_v28 = vld [vmem:[%s2742_s2 + $0xd0] sm:$0xf] }
 0x18e   : > { %v1245_v34 = vsel %vm1244_vm7, %v2443_v30, %v1243_v26  ;;  %v1252_v35 = vmul.f32 0.5, %v1251_v27  ;;  %v1047_v36 = vpop.f32.mrf.mxu1  ;;  %v1887_v30 = vld [vmem:[%s2742_s2 + $0xc4] sm:$0xf0]  ;;  %v1921_v27 = vld [vmem:[%s2742_s2 + $0x1d4] sm:$0xf0] }
 0x18f   : > { %v1248_v38 = vsel %vm1246_vm8, %v1247_v31, %v1245_v34  ;;  %v1184_v40 = vmul.f32 %v1110_v32, %v1110_v32  ;;  %v1048_v46 = vadd.f32 %v1047_v36, %v908_v2  ;;  %v1693_v51 = vor.u32 %v1887_v30, %v1692_v42 }
 0x190   : > { %1419 = vst [vmem:[%s2463_s5 + $0x10] sm:$0xff] %v1248_v38  ;;  %v1253_v43 = vsub.f32 1.5, %v1252_v35  ;;  %v1829_v37 = vor.u32 %v1921_v27, %v1828_v23 }
 0x191   : > { %v1995_v44 = vpop.eup %1994  ;;  %v2526_v45 = vadd.f32 %v1184_v40, %v1167_v39  ;;  %1081 = vmatmul.bf16.gmra.mxu1 %v1689_v29  ;;  %1146 = vmatmul.bf16.gmra.mxu3 %v1817_v33  ;;  %v975_v47 = vpop.f32.mrf.mxu2  ;;  %v1168_v57 = vmul.f32 %v1048_v46, %v1048_v46 }
 0x192   : > { %v1254_v48 = vmul.f32 %v1993_v16, %v1253_v43  ;;  %v1262_v49 = vmul.f32 %v1995_v44, %v2492_v17 }
 0x193   : > { %1996 = vrsqrt.f32 %v2526_v45  ;;  %v913_v52 = vpop.f32.mrf.mxu0  ;;  %vm1280_vm13 = vcmp.eq.f32.partialorder %v2526_v45, inf  ;;  %v1283_v30 = vand.u32 2147483648, %v2526_v45  ;;  %vm1282_vm14 = vcmp.eq.f32.partialorder %v2526_v45, 0.0 }
 0x194   : > { %v1255_v53 = vmul.f32 %v1254_v48, %v2482_v59  ;;  %v1263_v54 = vmul.f32 %v1995_v44, %v1262_v49  ;;  %v1112_v55 = vpop.f32.mrf.mxu3 }
 0x195   : > { %v1113_v58 = vadd.f32 %v1112_v55, %v973_v18  ;;  %v1271_v18 = vand.u32 2147483648, %v2492_v17  ;;  %v1888_v55 = vld [vmem:[%s2742_s2 + $0xd4] sm:$0xf] }
 0x196   : > { %v1257_v60 = vsel %vm1256_vm9, %v2482_v59, %v1255_v53  ;;  %v1264_v61 = vmul.f32 0.5, %v1263_v54  ;;  %v1049_v62 = vpop.f32.mrf.mxu1  ;;  %1010 = vmatmul.bf16.gmra.mxu2 %v1821_v50  ;;  %945 = vmatmul.bf16.gmra.mxu0 %v1693_v51  ;;  %v1694_v59 = vld [vmem:[%s2742_s2 + $0xc8] sm:$0xf0] }
 0x197   : > { %v1260_v63 = vsel %vm1258_vm10, %v1259_v56, %v1257_v60  ;;  %v1185_v0 = vmul.f32 %v1113_v58, %v1113_v58  ;;  %v1050_v10 = vadd.f32 %v1049_v62, %v910_v25  ;;  %v1697_v16 = vor.u32 %v1886_v5, %v1694_v59  ;;  %v1920_v58 = vld [vmem:[%s2742_s2 + $0x1d4] sm:$0xf]  ;;  %v1830_v60 = vld [vmem:[%s2742_s2 + $0x1d8] sm:$0xf0] }
 0x198   : > { %1420 = vst [vmem:[%s2463_s5 + $0x18] sm:$0xff] %v1260_v63  ;;  %v1265_v1 = vsub.f32 1.5, %v1264_v61  ;;  %v1833_v59 = vor.u32 %v1920_v58, %v1830_v60  ;;  %v1844_v60 = vld [vmem:[%s2742_s2 + $0x1f0] sm:$0xf] }
 0x199   : > { %v1997_v2 = vpop.eup %1996  ;;  %v2536_v3 = vadd.f32 %v1185_v0, %v1168_v57  ;;  %v978_v4 = vpop.f32.mrf.mxu2  ;;  %v1169_v25 = vmul.f32 %v1050_v10, %v1050_v10 }
 0x19a   : > { %v1266_v6 = vmul.f32 %v1995_v44, %v1265_v1  ;;  %v1274_v7 = vmul.f32 %v1997_v2, %v2526_v45 }
 0x19b   : > { %1998 = vrsqrt.f32 %v2536_v3  ;;  %v915_v11 = vpop.f32.mrf.mxu0  ;;  %vm1292_vm15 = vcmp.eq.f32.partialorder %v2536_v3, inf  ;;  %vm1294_vm0 = vcmp.eq.f32.partialorder %v2536_v3, 0.0 }
 0x19c   : > { %v1267_v12 = vmul.f32 %v1266_v6, %v2492_v17  ;;  %v1275_v13 = vmul.f32 %v1997_v2, %v1274_v7  ;;  %v1114_v15 = vpop.f32.mrf.mxu3 }
 0x19d   : > { %v1115_v19 = vadd.f32 %v1114_v15, %v975_v47  ;;  %v1708_v15 = vld [vmem:[%s2742_s2 + $0xe0] sm:$0xf] }
 0x19e   : > { %v1269_v20 = vsel %vm1268_vm11, %v2492_v17, %v1267_v12  ;;  %v1276_v21 = vmul.f32 0.5, %v1275_v13  ;;  %v1052_v22 = vpop.f32.mrf.mxu1  ;;  %v1889_v17 = vld [vmem:[%s2742_s2 + $0xd4] sm:$0xf0]  ;;  %v1923_v13 = vld [vmem:[%s2742_s2 + $0x1e4] sm:$0xf0] }
 0x19f   : > { %v1272_v24 = vsel %vm1270_vm12, %v1271_v18, %v1269_v20  ;;  %v1186_v26 = vmul.f32 %v1115_v19, %v1115_v19  ;;  %v1053_v33 = vadd.f32 %v1052_v22, %v913_v52  ;;  %v1701_v38 = vor.u32 %v1889_v17, %v1700_v28 }
 0x1a0   : > { %1421 = vst [vmem:[%s2463_s5 + $0x20] sm:$0xff] %v1272_v24  ;;  %v1277_v29 = vsub.f32 1.5, %v1276_v21  ;;  %v1837_v23 = vor.u32 %v1923_v13, %v1836_v9 }
 0x1a1   : > { %v1999_v31 = vpop.eup %1998  ;;  %v2570_v32 = vadd.f32 %v1186_v26, %v1169_v25  ;;  %1084 = vmatmul.bf16.gmra.mxu1 %v1697_v16  ;;  %1149 = vmatmul.bf16.gmra.mxu3 %v1825_v14  ;;  %v980_v34 = vpop.f32.mrf.mxu2  ;;  %v1170_v43 = vmul.f32 %v1053_v33, %v1053_v33 }
 0x1a2   : > { %v1278_v35 = vmul.f32 %v1997_v2, %v1277_v29  ;;  %v1286_v36 = vmul.f32 %v1999_v31, %v2536_v3 }
 0x1a3   : > { %2000 = vrsqrt.f32 %v2570_v32  ;;  %v918_v39 = vpop.f32.mrf.mxu0  ;;  %vm1304_vm1 = vcmp.eq.f32.partialorder %v2570_v32, inf  ;;  %v1307_v17 = vand.u32 2147483648, %v2570_v32  ;;  %vm1306_vm2 = vcmp.eq.f32.partialorder %v2570_v32, 0.0 }
 0x1a4   : > { %v1279_v40 = vmul.f32 %v1278_v35, %v2526_v45  ;;  %v1287_v41 = vmul.f32 %v1999_v31, %v1286_v36  ;;  %v1117_v42 = vpop.f32.mrf.mxu3 }
 0x1a5   : > { %v1118_v44 = vadd.f32 %v1117_v42, %v978_v4  ;;  %v1295_v4 = vand.u32 2147483648, %v2536_v3  ;;  %v1890_v42 = vld [vmem:[%s2742_s2 + $0xe4] sm:$0xf] }
 0x1a6   : > { %v1281_v46 = vsel %vm1280_vm13, %v2526_v45, %v1279_v40  ;;  %v1288_v47 = vmul.f32 0.5, %v1287_v41  ;;  %v1054_v48 = vpop.f32.mrf.mxu1  ;;  %1013 = vmatmul.bf16.gmra.mxu2 %v1829_v37  ;;  %948 = vmatmul.bf16.gmra.mxu0 %v1701_v38  ;;  %v1702_v45 = vld [vmem:[%s2742_s2 + $0xd8] sm:$0xf0] }
 0x1a7   : > { %v1284_v49 = vsel %vm1282_vm14, %v1283_v30, %v1281_v46  ;;  %v1187_v50 = vmul.f32 %v1118_v44, %v1118_v44  ;;  %v1055_v61 = vadd.f32 %v1054_v48, %v915_v11  ;;  %v1705_v2 = vor.u32 %v1888_v55, %v1702_v45  ;;  %v1922_v44 = vld [vmem:[%s2742_s2 + $0x1e4] sm:$0xf]  ;;  %v1838_v46 = vld [vmem:[%s2742_s2 + $0x1e8] sm:$0xf0] }
 0x1a8   : > { %1422 = vst [vmem:[%s2463_s5 + $0x28] sm:$0xff] %v1284_v49  ;;  %v1289_v51 = vsub.f32 1.5, %v1288_v47  ;;  %v1841_v45 = vor.u32 %v1922_v44, %v1838_v46 }
 0x1a9   : > { %v2001_v52 = vpop.eup %2000  ;;  %v2580_v53 = vadd.f32 %v1187_v50, %v1170_v43  ;;  %v983_v54 = vpop.f32.mrf.mxu2  ;;  %v1171_v11 = vmul.f32 %v1055_v61, %v1055_v61 }
 0x1aa   : > { %v1290_v56 = vmul.f32 %v1999_v31, %v1289_v51  ;;  %v1298_v57 = vmul.f32 %v2001_v52, %v2570_v32 }
 0x1ab   : > { %2002 = vrsqrt.f32 %v2580_v53  ;;  %v920_v62 = vpop.f32.mrf.mxu0  ;;  %vm1316_vm3 = vcmp.eq.f32.partialorder %v2580_v53, inf  ;;  %vm1318_vm4 = vcmp.eq.f32.partialorder %v2580_v53, 0.0 }
 0x1ac   : > { %v1291_v63 = vmul.f32 %v1290_v56, %v2536_v3  ;;  %v1299_v0 = vmul.f32 %v2001_v52, %v1298_v57  ;;  %v1119_v1 = vpop.f32.mrf.mxu3 }
 0x1ad   : > { %v1120_v5 = vadd.f32 %v1119_v1, %v980_v34  ;;  %v1716_v1 = vld [vmem:[%s2742_s2 + $0xf0] sm:$0xf] }
 0x1ae   : > { %v1293_v6 = vsel %vm1292_vm15, %v2536_v3, %v1291_v63  ;;  %v1300_v7 = vmul.f32 0.5, %v1299_v0  ;;  %v1057_v8 = vpop.f32.mrf.mxu1  ;;  %v1891_v3 = vld [vmem:[%s2742_s2 + $0xe4] sm:$0xf0]  ;;  %v1925_v0 = vld [vmem:[%s2742_s2 + $0x1f4] sm:$0xf0] }
 0x1af   : > { %v1296_v10 = vsel %vm1294_vm0, %v1295_v4, %v1293_v6  ;;  %v1188_v12 = vmul.f32 %v1120_v5, %v1120_v5  ;;  %v1058_v14 = vadd.f32 %v1057_v8, %v918_v39  ;;  %v1709_v24 = vor.u32 %v1891_v3, %v1708_v15 }
 0x1b0   : > { %1423 = vst [vmem:[%s2463_s5 + $0x30] sm:$0xff] %v1296_v10  ;;  %v1301_v16 = vsub.f32 1.5, %v1300_v7  ;;  %v1845_v9 = vor.u32 %v1925_v0, %v1844_v60 }
 0x1b1   : > { %v2003_v18 = vpop.eup %2002  ;;  %v2614_v19 = vadd.f32 %v1188_v12, %v1171_v11  ;;  %1087 = vmatmul.bf16.gmra.mxu1 %v1705_v2  ;;  %1152 = vmatmul.bf16.gmra.mxu3 %v1833_v59  ;;  %v985_v20 = vpop.f32.mrf.mxu2  ;;  %v1172_v29 = vmul.f32 %v1058_v14, %v1058_v14 }
 0x1b2   : > { %v1302_v21 = vmul.f32 %v2001_v52, %v1301_v16  ;;  %v1310_v22 = vmul.f32 %v2003_v18, %v2580_v53 }
 0x1b3   : > { %2004 = vrsqrt.f32 %v2614_v19  ;;  %v923_v25 = vpop.f32.mrf.mxu0  ;;  %vm1328_vm5 = vcmp.eq.f32.partialorder %v2614_v19, inf  ;;  %v1331_v3 = vand.u32 2147483648, %v2614_v19  ;;  %vm1330_vm6 = vcmp.eq.f32.partialorder %v2614_v19, 0.0 }
 0x1b4   : > { %v1303_v26 = vmul.f32 %v1302_v21, %v2570_v32  ;;  %v1311_v27 = vmul.f32 %v2003_v18, %v1310_v22  ;;  %v1122_v28 = vpop.f32.mrf.mxu3 }
 0x1b5   : > { %v1123_v31 = vadd.f32 %v1122_v28, %v983_v54  ;;  %v1319_v54 = vand.u32 2147483648, %v2580_v53  ;;  %v1892_v28 = vld [vmem:[%s2742_s2 + $0xf4] sm:$0xf] }
 0x1b6   : > { %v1305_v33 = vsel %vm1304_vm1, %v2570_v32, %v1303_v26  ;;  %v1312_v34 = vmul.f32 0.5, %v1311_v27  ;;  %v1059_v35 = vpop.f32.mrf.mxu1  ;;  %1016 = vmatmul.bf16.gmra.mxu2 %v1837_v23  ;;  %951 = vmatmul.bf16.gmra.mxu0 %v1709_v24  ;;  %v1710_v32 = vld [vmem:[%s2742_s2 + $0xe8] sm:$0xf0] }
 0x1b7   : > { %v1308_v36 = vsel %vm1306_vm2, %v1307_v17, %v1305_v33  ;;  %v1189_v37 = vmul.f32 %v1123_v31, %v1123_v31  ;;  %v1060_v47 = vadd.f32 %v1059_v35, %v920_v62  ;;  %v1713_v52 = vor.u32 %v1890_v42, %v1710_v32  ;;  %v1924_v31 = vld [vmem:[%s2742_s2 + $0x1f4] sm:$0xf]  ;;  %v1846_v33 = vld [vmem:[%s2742_s2 + $0x1f8] sm:$0xf0] }
 0x1b8   : > { %1424 = vst [vmem:[%s2463_s5 + $0x38] sm:$0xff] %v1308_v36  ;;  %v1313_v38 = vsub.f32 1.5, %v1312_v34  ;;  %v1849_v32 = vor.u32 %v1924_v31, %v1846_v33 }
 0x1b9   : > { %v2005_v39 = vpop.eup %2004  ;;  %v2624_v40 = vadd.f32 %v1189_v37, %v1172_v29  ;;  %v988_v41 = vpop.f32.mrf.mxu2  ;;  %v1173_v62 = vmul.f32 %v1060_v47, %v1060_v47 }
 0x1ba   : > { %v1314_v30 = vmul.f32 %v2003_v18, %v1313_v38  ;;  %v1322_v43 = vmul.f32 %v2005_v39, %v2614_v19 }
 0x1bb   : > { %2006 = vrsqrt.f32 %v2624_v40  ;;  %v925_v48 = vpop.f32.mrf.mxu0  ;;  %vm1340_vm7 = vcmp.eq.f32.partialorder %v2624_v40, inf  ;;  %vm1342_vm8 = vcmp.eq.f32.partialorder %v2624_v40, 0.0 }
 0x1bc   : > { %v1315_v49 = vmul.f32 %v1314_v30, %v2580_v53  ;;  %v1323_v50 = vmul.f32 %v2005_v39, %v1322_v43  ;;  %v1124_v51 = vpop.f32.mrf.mxu3 }
 0x1bd   : > { %v1125_v55 = vadd.f32 %v1124_v51, %v985_v20 }
 0x1be   : > { %v1317_v56 = vsel %vm1316_vm3, %v2580_v53, %v1315_v49  ;;  %v1324_v57 = vmul.f32 0.5, %v1323_v50  ;;  %v1062_v58 = vpop.f32.mrf.mxu1  ;;  %v1893_v53 = vld [vmem:[%s2742_s2 + $0xf4] sm:$0xf0] }
 0x1bf   : > { %v1320_v61 = vsel %vm1318_vm4, %v1319_v54, %v1317_v56  ;;  %v1190_v63 = vmul.f32 %v1125_v55, %v1125_v55  ;;  %v1063_v59 = vadd.f32 %v1062_v58, %v923_v25  ;;  %v1717_v10 = vor.u32 %v1893_v53, %v1716_v1 }
 0x1c0   : > { %1425 = vst [vmem:[%s2463_s5 + $0x40] sm:$0xff] %v1320_v61  ;;  %v1325_v2 = vsub.f32 1.5, %v1324_v57 }
 0x1c1   : > { %v2007_v4 = vpop.eup %2006  ;;  %v2658_v5 = vadd.f32 %v1190_v63, %v1173_v62  ;;  %1090 = vmatmul.bf16.gmra.mxu1 %v1713_v52  ;;  %1155 = vmatmul.bf16.gmra.mxu3 %v1841_v45  ;;  %v990_v6 = vpop.f32.mrf.mxu2  ;;  %v1174_v16 = vmul.f32 %v1063_v59, %v1063_v59 }
 0x1c2   : > { %v1326_v7 = vmul.f32 %v2005_v39, %v1325_v2  ;;  %v1334_v8 = vmul.f32 %v2007_v4, %v2624_v40 }
 0x1c3   : > { %2008 = vrsqrt.f32 %v2658_v5  ;;  %v928_v11 = vpop.f32.mrf.mxu0  ;;  %vm1352_vm9 = vcmp.eq.f32.partialorder %v2658_v5, inf  ;;  %v1355_v60 = vand.u32 2147483648, %v2658_v5  ;;  %vm1354_vm10 = vcmp.eq.f32.partialorder %v2658_v5, 0.0 }
 0x1c4   : > { %v1327_v12 = vmul.f32 %v1326_v7, %v2614_v19  ;;  %v1335_v13 = vmul.f32 %v2007_v4, %v1334_v8  ;;  %v1127_v15 = vpop.f32.mrf.mxu3 }
 0x1c5   : > { %v1128_v18 = vadd.f32 %v1127_v15, %v988_v41  ;;  %v1343_v41 = vand.u32 2147483648, %v2624_v40 }
 0x1c6   : > { %v1329_v14 = vsel %vm1328_vm5, %v2614_v19, %v1327_v12  ;;  %v1336_v20 = vmul.f32 0.5, %v1335_v13  ;;  %v1064_v21 = vpop.f32.mrf.mxu1  ;;  %1019 = vmatmul.bf16.gmra.mxu2 %v1845_v9  ;;  %954 = vmatmul.bf16.gmra.mxu0 %v1717_v10  ;;  %v1718_v19 = vld [vmem:[%s2742_s2 + $0xf8] sm:$0xf0] }
 0x1c7   : > { %v1332_v22 = vsel %vm1330_vm6, %v1331_v3, %v1329_v14  ;;  %v1191_v23 = vmul.f32 %v1128_v18, %v1128_v18  ;;  %v1065_v34 = vadd.f32 %v1064_v21, %v925_v48  ;;  %v1721_v39 = vor.u32 %v1892_v28, %v1718_v19 }
 0x1c8   : > { %1426 = vst [vmem:[%s2463_s5 + $0x48] sm:$0xff] %v1332_v22  ;;  %v1337_v24 = vsub.f32 1.5, %v1336_v20 }
 0x1c9   : > { %v2009_v25 = vpop.eup %2008  ;;  %v2668_v26 = vadd.f32 %v1191_v23, %v1174_v16  ;;  %v993_v27 = vpop.f32.mrf.mxu2  ;;  %v1175_v47 = vmul.f32 %v1065_v34, %v1065_v34 }
 0x1ca   : > { %v1338_v17 = vmul.f32 %v2007_v4, %v1337_v24  ;;  %v1346_v29 = vmul.f32 %v2009_v25, %v2658_v5 }
 0x1cb   : > { %2010 = vrsqrt.f32 %v2668_v26  ;;  %v930_v35 = vpop.f32.mrf.mxu0  ;;  %vm1364_vm11 = vcmp.eq.f32.partialorder %v2668_v26, inf  ;;  %v1367_v15 = vand.u32 2147483648, %v2668_v26  ;;  %vm1366_vm12 = vcmp.eq.f32.partialorder %v2668_v26, 0.0 }
 0x1cc   : > { %v1339_v36 = vmul.f32 %v1338_v17, %v2624_v40  ;;  %v1347_v37 = vmul.f32 %v2009_v25, %v1346_v29  ;;  %v1129_v38 = vpop.f32.mrf.mxu3 }
 0x1cd   : > { %v1130_v42 = vadd.f32 %v1129_v38, %v990_v6 }
 0x1ce   : > { %v1341_v30 = vsel %vm1340_vm7, %v2624_v40, %v1339_v36  ;;  %v1348_v43 = vmul.f32 0.5, %v1347_v37  ;;  %v1067_v44 = vpop.f32.mrf.mxu1 }
 0x1cf   : > { %v1344_v46 = vsel %vm1342_vm8, %v1343_v41, %v1341_v30  ;;  %v1192_v48 = vmul.f32 %v1130_v42, %v1130_v42  ;;  %v1068_v52 = vadd.f32 %v1067_v44, %v928_v11 }
 0x1d0   : > { %1427 = vst [vmem:[%s2463_s5 + $0x50] sm:$0xff] %v1344_v46  ;;  %v1349_v49 = vsub.f32 1.5, %v1348_v43 }
 0x1d1   : > { %v2011_v50 = vpop.eup %2010  ;;  %v2690_v51 = vadd.f32 %v1192_v48, %v1175_v47  ;;  %1093 = vmatmul.bf16.gmra.mxu1 %v1721_v39  ;;  %1158 = vmatmul.bf16.gmra.mxu3 %v1849_v32  ;;  %v995_v54 = vpop.f32.mrf.mxu2  ;;  %v1176_v61 = vmul.f32 %v1068_v52, %v1068_v52 }
 0x1d2   : > { %v1350_v55 = vmul.f32 %v2009_v25, %v1349_v49  ;;  %v1358_v45 = vmul.f32 %v2011_v50, %v2668_v26 }
 0x1d3   : > { %2012 = vrsqrt.f32 %v2690_v51  ;;  %v933_v40 = vpop.f32.mrf.mxu0  ;;  %vm1376_vm13 = vcmp.eq.f32.partialorder %v2690_v51, inf  ;;  %v1379_v34 = vand.u32 2147483648, %v2690_v51  ;;  %vm1378_vm14 = vcmp.eq.f32.partialorder %v2690_v51, 0.0 }
 0x1d4   : > { %v1351_v56 = vmul.f32 %v1350_v55, %v2658_v5  ;;  %v1359_v57 = vmul.f32 %v2011_v50, %v1358_v45  ;;  %v1132_v58 = vpop.f32.mrf.mxu3 }
 0x1d5   : > { %v1133_v62 = vadd.f32 %v1132_v58, %v993_v27 }
 0x1d6   : > { %v1353_v63 = vsel %vm1352_vm9, %v2658_v5, %v1351_v56  ;;  %v1360_v0 = vmul.f32 0.5, %v1359_v57  ;;  %v1069_v1 = vpop.f32.mrf.mxu1 }
 0x1d7   : > { %v1356_v53 = vsel %vm1354_vm10, %v1355_v60, %v1353_v63  ;;  %v1193_v2 = vmul.f32 %v1133_v62, %v1133_v62  ;;  %v1070_v10 = vadd.f32 %v1069_v1, %v930_v35 }
 0x1d8   : > { %1428 = vst [vmem:[%s2463_s5 + $0x58] sm:$0xff] %v1356_v53  ;;  %v1361_v4 = vsub.f32 1.5, %v1360_v0 }
 0x1d9   : > { %v2013_v59 = vpop.eup %2012  ;;  %v2700_v6 = vadd.f32 %v1193_v2, %v1176_v61  ;;  %v998_v7 = vpop.f32.mrf.mxu2  ;;  %v1177_v21 = vmul.f32 %v1070_v10, %v1070_v10 }
 0x1da   : > { %v1362_v8 = vmul.f32 %v2011_v50, %v1361_v4  ;;  %v1370_v9 = vmul.f32 %v2013_v59, %v2690_v51 }
 0x1db   : > { %2014 = vrsqrt.f32 %v2700_v6  ;;  %v935_v11 = vpop.f32.mrf.mxu0  ;;  %vm1388_vm15 = vcmp.eq.f32.partialorder %v2700_v6, inf  ;;  %vm1390_vm0 = vcmp.eq.f32.partialorder %v2700_v6, 0.0 }
 0x1dc   : > { %v1363_v5 = vmul.f32 %v1362_v8, %v2668_v26  ;;  %v1371_v12 = vmul.f32 %v2013_v59, %v1370_v9  ;;  %v1134_v13 = vpop.f32.mrf.mxu3 }
 0x1dd   : > { %v1135_v3 = vadd.f32 %v1134_v13, %v995_v54 }
 0x1de   : > { %v1365_v16 = vsel %vm1364_vm11, %v2668_v26, %v1363_v5  ;;  %v1372_v18 = vmul.f32 0.5, %v1371_v12  ;;  %v1072_v14 = vpop.f32.mrf.mxu1 }
 0x1df   : > { %v1368_v20 = vsel %vm1366_vm12, %v1367_v15, %v1365_v16  ;;  %v1194_v22 = vmul.f32 %v1135_v3, %v1135_v3  ;;  %v1073_v27 = vadd.f32 %v1072_v14, %v933_v40 }
 0x1e0   : > { %1429 = vst [vmem:[%s2463_s5 + $0x60] sm:$0xff] %v1368_v20  ;;  %v1373_v23 = vsub.f32 1.5, %v1372_v18 }
 0x1e1   : > { %v2015_v24 = vpop.eup %2014  ;;  %v1211_v25 = vadd.f32 %v1194_v22, %v1177_v21  ;;  %v1000_v28 = vpop.f32.mrf.mxu2  ;;  %v1178_v35 = vmul.f32 %v1073_v27, %v1073_v27 }
 0x1e2   : > { %v1374_v19 = vmul.f32 %v2013_v59, %v1373_v23  ;;  %v1382_v17 = vmul.f32 %v2015_v24, %v2700_v6 }
 0x1e3   : > { %2016 = vrsqrt.f32 %v1211_v25  ;;  %v937_v29 = vpop.f32.mrf.mxu0  ;;  %vm1400_vm1 = vcmp.eq.f32.partialorder %v1211_v25, inf  ;;  %v1403_v53 = vand.u32 2147483648, %v1211_v25  ;;  %vm1402_vm2 = vcmp.eq.f32.partialorder %v1211_v25, 0.0 }
 0x1e4   : > { %v1375_v31 = vmul.f32 %v1374_v19, %v2690_v51  ;;  %v1383_v26 = vmul.f32 %v2015_v24, %v1382_v17  ;;  %v1137_v33 = vpop.f32.mrf.mxu3 }
 0x1e5   : > { %v1138_v36 = vadd.f32 %v1137_v33, %v998_v7 }
 0x1e6   : > { %v1377_v37 = vsel %vm1376_vm13, %v2690_v51, %v1375_v31  ;;  %v1384_v38 = vmul.f32 0.5, %v1383_v26  ;;  %v1074_v39 = vpop.f32.mrf.mxu1  ;;  %v1391_v51 = vand.u32 2147483648, %v2700_v6 }
 0x1e7   : > { %v1380_v41 = vsel %vm1378_vm14, %v1379_v34, %v1377_v37  ;;  %v1195_v42 = vmul.f32 %v1138_v36, %v1138_v36 }
 0x1e8   : > { %1430 = vst [vmem:[%s2463_s5 + $0x68] sm:$0xff] %v1380_v41  ;;  %v1385_v32 = vsub.f32 1.5, %v1384_v38 }
 0x1e9   : > { %v2017_v30 = vpop.eup %2016  ;;  %v1212_v43 = vadd.f32 %v1195_v42, %v1178_v35  ;;  %v1002_v44 = vpop.f32.mrf.mxu2 }
 0x1ea   : > { %v1386_v46 = vmul.f32 %v2015_v24, %v1385_v32  ;;  %v1394_v47 = vmul.f32 %v2017_v30, %v1211_v25 }
 0x1eb   : > { %2018 = vrsqrt.f32 %v1212_v43  ;;  %v938_v48 = vpop.f32.mrf.mxu0  ;;  %vm1412_vm3 = vcmp.eq.f32.partialorder %v1212_v43, inf  ;;  %v1415_v12 = vand.u32 2147483648, %v1212_v43  ;;  %vm1414_vm4 = vcmp.eq.f32.partialorder %v1212_v43, 0.0 }
 0x1ec   : > { %v1387_v49 = vmul.f32 %v1386_v46, %v2700_v6  ;;  %v1395_v50 = vmul.f32 %v2017_v30, %v1394_v47  ;;  %v1139_v52 = vpop.f32.mrf.mxu3 }
 0x1ee   : > { %v1389_v54 = vsel %vm1388_vm15, %v2700_v6, %v1387_v49  ;;  %v1396_v55 = vmul.f32 0.5, %v1395_v50  ;;  %v1076_v45 = vpop.f32.mrf.mxu1 }
 0x1ef   : > { %v1392_v40 = vsel %vm1390_vm0, %v1391_v51, %v1389_v54 }
 0x1f0   : > { %1431 = vst [vmem:[%s2463_s5 + $0x70] sm:$0xff] %v1392_v40  ;;  %v1397_v56 = vsub.f32 1.5, %v1396_v55 }
 0x1f1   : > { %v2019_v57 = vpop.eup %2018  ;;  %v1003_v58 = vpop.f32.mrf.mxu2 }
 0x1f2   : > { %v1398_v60 = vmul.f32 %v2017_v30, %v1397_v56  ;;  %v1406_v61 = vmul.f32 %v2019_v57, %v1212_v43 }
 0x1f3   : > { %v940_v62 = vpop.f32.mrf.mxu0 }
 0x1f4   : > { %v1399_v63 = vmul.f32 %v1398_v60, %v1211_v25  ;;  %v1407_v0 = vmul.f32 %v2019_v57, %v1406_v61  ;;  %v1141_v1 = vpop.f32.mrf.mxu3 }
 0x1f6   : > { %v1401_v2 = vsel %vm1400_vm1, %v1211_v25, %v1399_v63  ;;  %v1408_v4 = vmul.f32 0.5, %v1407_v0  ;;  %v1077_v59 = vpop.f32.mrf.mxu1 }
 0x1f7   : > { %v1404_v6 = vsel %vm1402_vm2, %v1403_v53, %v1401_v2 }
 0x1f8   : > { %1432 = vst [vmem:[%s2463_s5 + $0x78] sm:$0xff] %v1404_v6  ;;  %v1409_v7 = vsub.f32 1.5, %v1408_v4 }
 0x1f9   : > { %v1005_v8 = vpop.f32.mrf.mxu2 }
 0x1fa   : > { %v1410_v9 = vmul.f32 %v2019_v57, %v1409_v7 }
 0x1fb   : > { %v941_v10 = vpop.f32.mrf.mxu0 }
 0x1fc   : > { %v1411_v11 = vmul.f32 %v1410_v9, %v1212_v43  ;;  %v1142_v5 = vpop.f32.mrf.mxu3 }
 0x1fe   : > { %v1413_v13 = vsel %vm1412_vm3, %v1212_v43, %v1411_v11  ;;  %v1079_v15 = vpop.f32.mrf.mxu1 }
 0x1ff   : > { %v1416_v3 = vsel %vm1414_vm4, %v1415_v12, %v1413_v13 }
 0x200   : > { %1433 = vst [vmem:[%s2463_s5 + $0x80] sm:$0x1] %v1416_v3 }
 0x201   : > { %v1006_v16 = vpop.f32.mrf.mxu2 }
 0x203   : > { %v943_v18 = vpop.f32.mrf.mxu0 }
 0x204   : > { %v1144_v14 = vpop.f32.mrf.mxu3 }
 0x206   : > { %v1080_v20 = vpop.f32.mrf.mxu1 }
 0x209   : > { %v1008_v21 = vpop.f32.mrf.mxu2 }
 0x20b   : > { %v944_v22 = vpop.f32.mrf.mxu0 }
 0x20c   : > { %v1145_v23 = vpop.f32.mrf.mxu3 }
 0x20e   : > { %v1082_v24 = vpop.f32.mrf.mxu1 }
 0x211   : > { %v1009_v25 = vpop.f32.mrf.mxu2 }
 0x213   : > { %v946_v27 = vpop.f32.mrf.mxu0 }
 0x214   : > { %v1147_v28 = vpop.f32.mrf.mxu3 }
 0x216   : > { %v1083_v19 = vpop.f32.mrf.mxu1 }
 0x219   : > { %v1011_v17 = vpop.f32.mrf.mxu2 }
 0x21b   : > { %v947_v29 = vpop.f32.mrf.mxu0 }
 0x21c   : > { %v1148_v31 = vpop.f32.mrf.mxu3 }
 0x21e   : > { %v1085_v26 = vpop.f32.mrf.mxu1 }
 0x221   : > { %v1012_v33 = vpop.f32.mrf.mxu2 }
 0x223   : > { %v949_v34 = vpop.f32.mrf.mxu0 }
 0x224   : > { %v1150_v35 = vpop.f32.mrf.mxu3 }
 0x226   : > { %v1086_v36 = vpop.f32.mrf.mxu1 }
 0x229   : > { %v1014_v37 = vpop.f32.mrf.mxu2 }
 0x22b   : > { %v950_v38 = vpop.f32.mrf.mxu0 }
 0x22c   : > { %v1151_v39 = vpop.f32.mrf.mxu3 }
 0x22e   : > { %v1088_v41 = vpop.f32.mrf.mxu1 }
 0x231   : > { %v1015_v42 = vpop.f32.mrf.mxu2 }
 0x233   : > { %v952_v32 = vpop.f32.mrf.mxu0 }
 0x234   : > { %v1153_v30 = vpop.f32.mrf.mxu3 }
 0x236   : > { %v1089_v43 = vpop.f32.mrf.mxu1 }
 0x239   : > { %v1017_v44 = vpop.f32.mrf.mxu2 }
 0x23b   : > { %v953_v46 = vpop.f32.mrf.mxu0 }
 0x23c   : > { %v1154_v47 = vpop.f32.mrf.mxu3 }
 0x23e   : > { %v1091_v48 = vpop.f32.mrf.mxu1 }
 0x241   : > { %v1018_v49 = vpop.f32.mrf.mxu2 }
 0x243   : > { %v955_v50 = vpop.f32.mrf.mxu0 }
 0x244   : > { %v1156_v52 = vpop.f32.mrf.mxu3 }
 0x246   : > { %v1092_v51 = vpop.f32.mrf.mxu1 }
 0x249   : > { %v1020_v54 = vpop.f32.mrf.mxu2 }
 0x24b   : > { %v956_v55 = vpop.f32.mrf.mxu0 }
 0x24c   : > { %v1157_v45 = vpop.f32.mrf.mxu3 }
 0x24e   : > { %v1094_v40 = vpop.f32.mrf.mxu1 }
 0x251   : > { %v1021_v56 = vpop.f32.mrf.mxu2 }
 0x254   : > { %v1159_v57 = vpop.f32.mrf.mxu3 }
 0x256   : > { %v1095_v58 = vpop.f32.mrf.mxu1 }
 0x25c   : > { %v1160_v60 = vpop.f32.mrf.mxu3 }
 0x25d PF: > { %s13_s16 = sadd.s32 1, %s2058_s16   ;;  %s2745_s12 = smov %s2046_s13 }
 0x25e   : > { %p10_p10 = scmp.ge.s32.totalorder %s13_s16, 4   ;;  %s2746_s13 = smov %s2122_s21 }
 0x25f   : > { %s2747_s14 = smov %s2054_s15  ;;  %s2748_s15 = smov %s2750_s17 }
 0x260   :  { %12 = sbr.rel (!%p10_p10) target bundleno = 3 (0x3), region = 157 }

</bundles_post_ra>
